<compile_context>
chip_gen: v6e
topology: v6e:2x2x1
jax: 0.10.0
libtpu: 0.0.40
codegen_flags: <defaults>
</compile_context>

<pallas_src>
import jax
import jax.numpy as jnp
from jax.experimental import pallas as pl
from jax.experimental.pallas import tpu as pltpu
import numpy as np


def model_kernel(tok_ref, emb_ref, w_ref, b_ref, out_ref):
    tok = tok_ref[...]                               # (B, S) int32
    B, S = tok.shape
    V = emb_ref.shape[0]

    # Fold Linear(D -> 1) into the embedding table: ew[v] = E[v, :] @ w   -> (V, 1)
    ew = jnp.dot(emb_ref[...], w_ref[...], preferred_element_type=jnp.float32)

    # Per-row token histogram: counts[b, v] = #{s : tok[b, s] == v}.
    # One-hot compare is pure VPU work; summing over the sequence axis keeps
    # the MXU problem at B rows instead of B*S rows.
    iota_v = jax.lax.broadcasted_iota(jnp.int32, (B, S, V), 2)
    one_hot = (tok[:, :, None] == iota_v).astype(jnp.float32)   # (B, S, V)
    counts = jnp.sum(one_hot, axis=1)                           # (B, V)

    # Average-pool + classifier collapse into a single (B, V)@(V, 1) matvec.
    bias = b_ref[0, 0]                                          # scalar read from SMEM
    logits = jnp.dot(counts, ew,
                     preferred_element_type=jnp.float32) * (1.0 / S) + bias  # (B, 1)

    # sigmoid(x) = 1 / (1 + exp(-x)); exp lowers to the EUP slot.
    out_ref[...] = pl.reciprocal(1.0 + jnp.exp(-logits), approx=False)


def torch_model_forward(tokens, emb_table, w_t, b):
    """tokens: (B,S) int32; emb_table: (V,D) f32; w_t: (D,1) f32; b: (1,1) f32."""
    B, _ = tokens.shape
    vmem = pl.BlockSpec(memory_space=pltpu.MemorySpace.VMEM)
    smem = pl.BlockSpec(memory_space=pltpu.MemorySpace.SMEM)
    return pl.pallas_call(
        model_kernel,
        out_shape=jax.ShapeDtypeStruct((B, 1), jnp.float32),
        in_specs=[vmem, vmem, vmem, smem],
        out_specs=vmem,
    )(tokens, emb_table, w_t, b)


def reference_forward(tokens, emb_table, w_t, b):
    emb = emb_table[tokens]                  # (B, S, D)
    pooled = emb.mean(axis=1)                # (B, D)
    logits = pooled @ w_t + b                # (B, 1)
    return jax.nn.sigmoid(logits)


if __name__ == "__main__":
    # Small shapes consistent with the module's forward.
    vocab_size = 28          # e.g. pad + 26 letters + unk
    vector_dim = 32
    sentence_length = 8
    batch = 8

    key = jax.random.PRNGKey(0)
    k_tok, k_emb, k_w, k_b = jax.random.split(key, 4)

    # Deterministic parameter init (synthetic, not a checkpoint load).
    emb_table = jax.random.normal(k_emb, (vocab_size, vector_dim), jnp.float32) * 0.1
    emb_table = emb_table.at[0].set(0.0)     # padding_idx=0 row is zero
    w = jax.random.normal(k_w, (1, vector_dim), jnp.float32) * 0.1    # nn.Linear weight (1, D)
    b = jax.random.normal(k_b, (1,), jnp.float32) * 0.1               # nn.Linear bias (1,)
    w_t = w.T                                # (D, 1) for the kernel
    b2d = b.reshape(1, 1)                    # (1, 1) scalar for SMEM

    tokens = jax.random.randint(k_tok, (batch, sentence_length), 0, vocab_size,
                                dtype=jnp.int32)

    y_pred = torch_model_forward(tokens, emb_table, w_t, b2d)
    jax.block_until_ready(y_pred)

    y_ref = reference_forward(tokens, emb_table, w_t, b2d)
    assert y_pred.shape == (batch, 1)
    assert np.allclose(np.asarray(y_pred), np.asarray(y_ref), atol=1e-5, rtol=1e-5)

    print("KERNEL_OK")
</pallas_src>

<mosaic_0001>
module attributes {stable_mosaic.version = 11 : i64} {
  func.func @model_kernel(%arg0: memref<8x8xi32, #tpu.memory_space<vmem>>, %arg1: memref<28x32xf32, #tpu.memory_space<vmem>>, %arg2: memref<32x1xf32, #tpu.memory_space<vmem>>, %arg3: memref<1x1xf32, #tpu.memory_space<smem>>, %arg4: memref<8x1xf32, #tpu.memory_space<vmem>>) attributes {dimension_semantics = [], scalar_prefetch = 0 : i64, scratch_operands = 0 : i64, tpu.core_type = #tpu.core_type<tc>} {
    %c0 = arith.constant 0 : index
    %c0_0 = arith.constant 0 : index
    %0 = vector.load %arg0[%c0, %c0_0] : memref<8x8xi32, #tpu.memory_space<vmem>>, vector<8x8xi32>
    %c0_1 = arith.constant 0 : index
    %c0_2 = arith.constant 0 : index
    %1 = vector.load %arg1[%c0_1, %c0_2] : memref<28x32xf32, #tpu.memory_space<vmem>>, vector<28x32xf32>
    %c0_3 = arith.constant 0 : index
    %c0_4 = arith.constant 0 : index
    %2 = vector.load %arg2[%c0_3, %c0_4] : memref<32x1xf32, #tpu.memory_space<vmem>>, vector<32x1xf32>
    %cst = arith.constant dense<0.000000e+00> : vector<28x1xf32>
    %3 = tpu.matmul %1, %2, %cst {dimension_numbers = #tpu.dot_dimension_numbers<[1], [0], [0], [1], [0, 0, 1, 1], [], []>} : vector<28x32xf32>, vector<32x1xf32>, vector<28x1xf32> -> vector<28x1xf32>
    %4 = tpu.iota {dimensions = array<i32: 2>} : vector<8x8x28xi32>
    %5 = vector.shape_cast %0 : vector<8x8xi32> to vector<8x8x1xi32>
    %6 = vector.broadcast %5 : vector<8x8x1xi32> to vector<8x8x28xi32>
    %7 = arith.cmpi eq, %6, %4 : vector<8x8x28xi32>
    %8 = arith.extui %7 : vector<8x8x28xi1> to vector<8x8x28xi32>
    %9 = arith.sitofp %8 : vector<8x8x28xi32> to vector<8x8x28xf32>
    %cst_5 = arith.constant dense<0.000000e+00> : vector<8x28xf32>
    %10 = vector.multi_reduction <add>, %9, %cst_5 [1] : vector<8x8x28xf32> to vector<8x28xf32>
    %c0_6 = arith.constant 0 : index
    %c0_7 = arith.constant 0 : index
    %11 = memref.load %arg3[%c0_6, %c0_7] : memref<1x1xf32, #tpu.memory_space<smem>>
    %cst_8 = arith.constant dense<0.000000e+00> : vector<8x1xf32>
    %12 = tpu.matmul %10, %3, %cst_8 {dimension_numbers = #tpu.dot_dimension_numbers<[1], [0], [0], [1], [0, 0, 1, 1], [], []>} : vector<8x28xf32>, vector<28x1xf32>, vector<8x1xf32> -> vector<8x1xf32>
    %cst_9 = arith.constant 1.250000e-01 : f32
    %13 = vector.broadcast %cst_9 : f32 to vector<8x1xf32>
    %14 = arith.mulf %12, %13 : vector<8x1xf32>
    %15 = vector.broadcast %11 : f32 to vector<8x1xf32>
    %16 = arith.addf %14, %15 : vector<8x1xf32>
    %cst_10 = arith.constant 0.000000e+00 : f32
    %17 = vector.broadcast %cst_10 : f32 to vector<8x1xf32>
    %18 = arith.subf %17, %16 : vector<8x1xf32>
    %19 = math.exp %18 : vector<8x1xf32>
    %cst_11 = arith.constant 1.000000e+00 : f32
    %20 = vector.broadcast %cst_11 : f32 to vector<8x1xf32>
    %21 = arith.addf %20, %19 : vector<8x1xf32>
    %22 = tpu.reciprocal %21 : vector<8x1xf32> -> vector<8x1xf32>
    %c0_12 = arith.constant 0 : index
    %c0_13 = arith.constant 0 : index
    %23 = vector.load %arg4[%c0_12, %c0_13] : memref<8x1xf32, #tpu.memory_space<vmem>>, vector<8x1xf32>
    tpu.vector_store %arg4[%c0_12, %c0_13], %22 {strides = array<i32>} : memref<8x1xf32, #tpu.memory_space<vmem>>, vector<8x1xf32>,
    return
  }
}

</mosaic_0001>

<bundles_post_ra>
// kernel: tpu_custom_call.1
= control target key start
LH: loop header
LB: loop body
LE: loop exit
PB: predicated region body
PF: predicated region fallthrough
CT: control target
= control target key end

     0   :  { %10 = vsyncpa [#allocation4], 0  ;;  %s471_s15 = smov [#allocation3]   ;;  %s558_s0 = inlined_call_operand.hbm [shape: s32[8,8], index: 0, kind: input, shape index: {}]   ;;  %s559_s1 = inlined_call_operand.vmem [shape: f32[28,32], index: 1, kind: input, shape index: {}]   ;;  %s560_s2 = inlined_call_operand.vmem [shape: f32[32,1], index: 2, kind: input, shape index: {}]   ;;  %s561_s3 = inlined_call_operand.<no memory space> [shape: f32[1,1], index: 3, kind: input, shape index: {}]   ;;  %s562_s4 = inlined_call_operand.vmem [shape: f32[8,1], index: 4, kind: output, shape index: {}]  }
   0x1   :  { %s17_s16 = sshll.u32 %s471_s15, 4  ;;  %s18_s16 = int_to_ptr.vmem [resolvable:$true] %s17_s16 }
   0x2   :  { %s457_s17 = scalar_lea.vmem %s18_s16, 128  ;;  %p462_p1 = scmp.lt.s32.totalorder %s18_s16, %s18_s16 }
   0x3   :  { %p458_p0 = scmp.ne.s32.totalorder %s18_s16, %s457_s17  ;;  %p463_p2 = scmp.lt.s32.totalorder %s457_s17, %s457_s17 }
   0x5   :  { %p464_p3 = por %p463_p2, %p462_p1 }
   0x7   :  { %p465_p4 = pnand %p464_p3, %p458_p0 }
   0x9   :  { %468 = shalt.err (!%p465_p4)
}
   0xa   :  { %20 = dma.hbm_to_vmem [thread:$0]  %s558_s0, 128, %s18_s16, [#allocation4]  }
   0xb   :  { %469 = dma.done.wait [#allocation4], 128  }
   0xc   :  { %470 = vsyncadd [#allocation4], 4294967168  ;;  %v137_v0 = vlaneseq  ;;  %v472_v1 = vmov 0.0   ;;  %vm39_vm0 = vcmask 261120   ;;  %v38_v5 = vld [vmem:[%s560_s2 + $0x18] sm:$0xff]  ;;  %v37_v6 = vld [vmem:[%s560_s2 + $0x10] sm:$0xff] }
   0xd   :  { %431 = vmatprep.subr.mxu1 %v472_v1  ;;  %417 = vmatprep.subr.mxu0 %v38_v5  ;;  %v31_v7 = vld [vmem:[%s559_s1] sm:$0xff]  ;;  %v36_v9 = vld [vmem:[%s560_s2 + $0x8] sm:$0xff]  ;;  %v33_v20 = vld [vmem:[%s559_s1 + $0x10] sm:$0xff]  ;;  %vm473_vm1 = vmmov 0   ;;  %vm219_vm4 = vcmask 228352   ;;  %vm285_vm11 = vcmask 1041409  }
   0xe   :  { %v140_v2 = vshrl.u32 %v137_v0, 7  ;;  %418 = vmatpush3.msra.mxu0 %v38_v5  ;;  %425 = vmatprep.mubr.msk.f32.mxu0 %vm39_vm0, %v31_v7  ;;  %v30_v10 = vld [vmem:[#allocation3] sm:$0xff]  ;;  %v32_v17 = vld [vmem:[%s559_s1 + $0x8] sm:$0xff]  ;;  %v34_v23 = vld [vmem:[%s559_s1 + $0x18] sm:$0xf]  ;;  %v138_v29 = vand.u32 127, %v137_v0 }
   0xf   :  { %419 = vmatprep.subr.mxu0 %v37_v6  ;;  %v35_v14 = vld [vmem:[%s560_s2] sm:$0xff]  ;;  %439 = vmatprep.mubr.msk.f32.mxu1 %vm473_vm1, %v472_v1  ;;  %vm287_vm12 = vcmask 1042434   ;;  %vm289_vm13 = vcmask 1043459   ;;  %vm291_vm14 = vcmask 1044484   ;;  %vm301_vm15 = vcmask 1043456  }
  0x10   :  { %v141_v3 = vsub.s32 0, %v140_v2  ;;  %v155_v4 = vsub.s32 2, %v140_v2  ;;  %v148_v8 = vsub.s32 1, %v140_v2  ;;  %v162_v11 = vsub.s32 3, %v140_v2  ;;  %420 = vmatpush3.msra.mxu0 %v37_v6 }
  0x11   :  { %421 = vmatprep.subr.mxu0 %v36_v9  ;;  %v169_v16 = vsub.s32 4, %v140_v2  ;;  %v176_v19 = vsub.s32 5, %v140_v2  ;;  %v183_v22 = vsub.s32 6, %v140_v2  ;;  %v190_v25 = vsub.s32 7, %v140_v2 }
  0x12   :  { %v142_v12 = vrot.slane %v30_v10, %v141_v3  ;;  %v156_v13 = vrot.slane %v30_v10, %v155_v4  ;;  %v149_v15 = vrot.slane %v30_v10, %v148_v8  ;;  %422 = vmatpush3.msra.mxu0 %v36_v9  ;;  %v163_v18 = vrot.slane %v30_v10, %v162_v11 }
  0x13   :  { %423 = vmatprep.subr.mxu0 %v35_v14  ;;  %v170_v21 = vrot.slane %v30_v10, %v169_v16  ;;  %v177_v24 = vrot.slane %v30_v10, %v176_v19  ;;  %v184_v26 = vrot.slane %v30_v10, %v183_v22  ;;  %v191_v27 = vrot.slane %v30_v10, %v190_v25 }
  0x14   :  { %144 = vbcast.lane.b32.xlu0 %v142_v12, 256  ;;  %158 = vbcast.lane.b32.xlu1 %v156_v13, 256  ;;  %vm295_vm1 = vcmask 1046534  }
  0x15   :  { %424 = vmatpush3.msra.mxu0 %v35_v14 }
  0x16   :  { %426 = vmatmul.mubr.msk.f32.vlgmr.msra.gmra.mxu0 %vm39_vm0, %v32_v17 }
  0x17   :  { %428 = vmatprep.mubr.msk.f32.mxu0 %vm39_vm0, %v33_v20 }
  0x18   :  { %151 = vbcast.lane.b32.xlu0 %v149_v15, 256  ;;  %165 = vbcast.lane.b32.xlu1 %v163_v18, 256 }
  0x1a   :  { %429 = vmatmul.mubr.msk.f32.gmra.mxu0 %vm39_vm0, %v34_v23  ;;  %vm293_vm0 = vcmask 1045509  }
  0x1c   :  { %172 = vbcast.lane.b32.xlu0 %v170_v21, 256  ;;  %179 = vbcast.lane.b32.xlu1 %v177_v24, 256 }
  0x20   :  { %186 = vbcast.lane.b32.xlu0 %v184_v26, 256  ;;  %193 = vbcast.lane.b32.xlu1 %v191_v27, 256 }
  0x86   :  { %v145_v28 = vpop.permute.xlu0 %144  ;;  %v159_v30 = vpop.permute.xlu1 %158 }
  0x87   :  { %vm195_vm2 = vcmp.eq.s32.totalorder %v145_v28, %v138_v29  ;;  %vm197_vm5 = vcmp.eq.s32.totalorder %v159_v30, %v138_v29 }
  0x88   :  { %v394_v32 = vsel %vm195_vm2, 1.0, %v472_v1  ;;  %v396_v36 = vsel %vm197_vm5, 1.0, %v472_v1  ;;  %vm297_vm2 = vcmask 1047559  }
  0x89   :  { %v220_v35 = vsel %vm219_vm4, %v394_v32, 0.0  ;;  %v234_v40 = vsel %vm219_vm4, %v396_v36, 0.0 }
  0x8a   :  { %v152_v31 = vpop.permute.xlu0 %151  ;;  %v166_v34 = vpop.permute.xlu1 %165  ;;  %v221_v39 = vrot.slane %v220_v35, 4  ;;  %v235_v44 = vrot.slane %v234_v40, 4 }
  0x8b   :  { %vm196_vm3 = vcmp.eq.s32.totalorder %v152_v31, %v138_v29  ;;  %vm198_vm6 = vcmp.eq.s32.totalorder %v166_v34, %v138_v29 }
  0x8c   :  { %v395_v33 = vsel %vm196_vm3, 1.0, %v472_v1  ;;  %v397_v42 = vsel %vm198_vm6, 1.0, %v472_v1  ;;  %v222_v45 = vadd.f32 %v221_v39, %v220_v35  ;;  %v236_v55 = vadd.f32 %v235_v44, %v234_v40 }
  0x8d   :  { %v227_v37 = vsel %vm219_vm4, %v395_v33, 0.0  ;;  %v241_v46 = vsel %vm219_vm4, %v397_v42, 0.0  ;;  %vm383_vm3 = vcmask 7168  }
  0x8e   :  { %v173_v38 = vpop.permute.xlu0 %172  ;;  %v228_v41 = vrot.slane %v227_v37, 4  ;;  %v180_v43 = vpop.permute.xlu1 %179  ;;  %v242_v50 = vrot.slane %v241_v46, 4  ;;  %v223_v54 = vrot.slane %v222_v45, 2  ;;  %v237_v62 = vrot.slane %v236_v55, 2 }
  0x8f   :  { %vm199_vm7 = vcmp.eq.s32.totalorder %v173_v38, %v138_v29  ;;  %vm200_vm8 = vcmp.eq.s32.totalorder %v180_v43, %v138_v29 }
  0x90   :  { %v398_v47 = vsel %vm199_vm7, 1.0, %v472_v1  ;;  %v229_v49 = vadd.f32 %v228_v41, %v227_v37  ;;  %v399_v52 = vsel %vm200_vm8, 1.0, %v472_v1  ;;  %v243_v60 = vadd.f32 %v242_v50, %v241_v46 }
  0x91   :  { %v248_v51 = vsel %vm219_vm4, %v398_v47, 0.0  ;;  %v255_v58 = vsel %vm219_vm4, %v399_v52, 0.0  ;;  %v224_v61 = vadd.f32 %v223_v54, %v222_v45  ;;  %v238_v6 = vadd.f32 %v237_v62, %v236_v55 }
  0x92   :  { %v187_v48 = vpop.permute.xlu0 %186  ;;  %v194_v53 = vpop.permute.xlu1 %193  ;;  %v230_v56 = vrot.slane %v229_v49, 2  ;;  %v249_v57 = vrot.slane %v248_v51, 4  ;;  %v256_v0 = vrot.slane %v255_v58, 4  ;;  %v244_v5 = vrot.slane %v243_v60, 2 }
  0x93   :  { %vm201_vm9 = vcmp.eq.s32.totalorder %v187_v48, %v138_v29  ;;  %vm202_vm10 = vcmp.eq.s32.totalorder %v194_v53, %v138_v29  ;;  %v225_v9 = vrot.slane %v224_v61, 1  ;;  %v239_v15 = vrot.slane %v238_v6, 1 }
  0x94   :  { %v400_v59 = vsel %vm201_vm9, 1.0, %v472_v1  ;;  %v231_v63 = vadd.f32 %v230_v56, %v229_v49  ;;  %v401_v3 = vsel %vm202_vm10, 1.0, %v472_v1  ;;  %v250_v4 = vadd.f32 %v249_v57, %v248_v51 }
  0x95   :  { %v262_v2 = vsel %vm219_vm4, %v400_v59, 0.0  ;;  %v269_v8 = vsel %vm219_vm4, %v401_v3, 0.0  ;;  %v257_v11 = vadd.f32 %v256_v0, %v255_v58  ;;  %v245_v13 = vadd.f32 %v244_v5, %v243_v60 }
  0x96   :  { %v263_v7 = vrot.slane %v262_v2, 4  ;;  %v232_v10 = vrot.slane %v231_v63, 1  ;;  %v251_v12 = vrot.slane %v250_v4, 2  ;;  %v270_v14 = vrot.slane %v269_v8, 4 }
  0x97   :  { %v226_v17 = vadd.f32 %v225_v9, %v224_v61  ;;  %v258_v19 = vrot.slane %v257_v11, 2  ;;  %v246_v21 = vrot.slane %v245_v13, 1  ;;  %v240_v23 = vadd.f32 %v239_v15, %v238_v6 }
  0x98   :  { %v264_v16 = vadd.f32 %v263_v7, %v262_v2  ;;  %v233_v18 = vadd.f32 %v232_v10, %v231_v63  ;;  %v252_v20 = vadd.f32 %v251_v12, %v250_v4  ;;  %v271_v22 = vadd.f32 %v270_v14, %v269_v8 }
  0x99   :  { %v259_v26 = vadd.f32 %v258_v19, %v257_v11  ;;  %v247_v28 = vadd.f32 %v246_v21, %v245_v13  ;;  %v376_v50 = vstv %s561_s3 }
  0x9a   :  { %v265_v24 = vrot.slane %v264_v16, 2  ;;  %v286_v25 = vsel %vm285_vm11, %v233_v18, %v226_v17  ;;  %v253_v27 = vrot.slane %v252_v20, 1  ;;  %v272_v29 = vrot.slane %v271_v22, 2 }
  0x9b   :  { %v288_v30 = vsel %vm287_vm12, %v240_v23, %v286_v25  ;;  %v260_v32 = vrot.slane %v259_v26, 1 }
  0x9c   :  { %v266_v31 = vadd.f32 %v265_v24, %v264_v16  ;;  %v254_v33 = vadd.f32 %v253_v27, %v252_v20  ;;  %v290_v34 = vsel %vm289_vm13, %v247_v28, %v288_v30  ;;  %v273_v35 = vadd.f32 %v272_v29, %v271_v22 }
  0x9d   :  { %v261_v38 = vadd.f32 %v260_v32, %v259_v26 }
  0x9e   :  { %v267_v36 = vrot.slane %v266_v31, 1  ;;  %v292_v40 = vsel %vm291_vm14, %v254_v33, %v290_v34  ;;  %v274_v41 = vrot.slane %v273_v35, 1 }
  0x9f   :  { %v294_v44 = vsel %vm293_vm0, %v261_v38, %v292_v40 }
  0xa0   :  { %v268_v42 = vadd.f32 %v267_v36, %v266_v31  ;;  %v275_v46 = vadd.f32 %v274_v41, %v273_v35 }
  0xa2   :  { %v296_v47 = vsel %vm295_vm1, %v268_v42, %v294_v44 }
  0xa3   :  { %v298_v48 = vsel %vm297_vm2, %v275_v46, %v296_v47 }
  0xd6   :  { %v427_v37 = vpop.f32.mrf.mxu0 }
  0xd8   :  { %v118_v39 = vpop.f32.mrf.mxu0 }
  0xda   :  { %v430_v43 = vpop.f32.mrf.mxu0 }
  0xdb   :  { %432 = vmatpush3.msk.msra.mxu1 %vm301_vm15, %v430_v43 }
  0xdc   :  { %v128_v45 = vpop.f32.mrf.mxu0  ;;  %433 = vmatprep.subr.mxu1 %v472_v1 }
  0xdd   :  { %434 = vmatpush3.msra.mxu1 %v128_v45 }
  0xde   :  { %435 = vmatprep.subr.mxu1 %v472_v1 }
  0xdf   :  { %436 = vmatpush3.msra.mxu1 %v427_v37 }
  0xe0   :  { %437 = vmatprep.subr.mxu1 %v472_v1 }
  0xe1   :  { %438 = vmatpush3.msra.mxu1 %v118_v39 }
  0xe2   :  { %440 = vmatmul.mubr.msk.f32.vlgmr.msra.gmra.mxu1 %vm219_vm4, %v298_v48 }
 0x1a2   :  { %v371_v49 = vpop.f32.mrf.mxu1 }
 0x1a3   :  { %v375_v51 = vmul.f32 0.125, %v371_v49 }
 0x1a4   :  { %v441_v52 = vpop.f32.mrf.mxu1 }
 0x1a5   :  { %v377_v53 = vadd.f32 %v376_v50, %v375_v51 }
 0x1a7   :  { %v378_v54 = vsub.f32 0.0, %v377_v53 }
 0x1a9   :  { %v379_v55 = vmul.f32 1.442695, %v378_v54 }
 0x1ab   :  { %445 = vpow2.f32 %v379_v55 }
 0x1b8   :  { %v446_v56 = vpop.eup %445 }
 0x1b9   :  { %v381_v57 = vadd.f32 1.0, %v446_v56 }
 0x1bb   :  { %447 = vrcp.f32 %v381_v57 }
 0x1c8   :  { %v448_v1 = vpop.eup %447 }
 0x1c9   :  { %384 = vst.msk [vmem:[%s562_s4] sm:$0xff] %vm383_vm3, %v448_v1 }
 0x1ca   :  { %389 = vsyncpa [#allocation4], 1 }

</bundles_post_ra>
